<compile_context>
chip_gen: v6e
topology: v6e:2x2x1
jax: 0.10.0
libtpu: 0.0.40
codegen_flags: <defaults>
</compile_context>

<pallas_src>
import functools

import jax
import jax.numpy as jnp
from jax import lax
from jax.experimental import pallas as pl
from jax.experimental.pallas import tpu as pltpu

_EPS = 1e-8          # per-norm clamp, matching F.cosine_similarity-style eps
_MASK = 2.0          # cosine similarity is bounded by 1, so 2.0 never wins a min

_TILE_VMEM_BUDGET = 28 * 1024 * 1024   # budget for tile buffers (fits v7x 64 MiB VMEM)
_VMEM_LIMIT_BYTES = 48 * 1024 * 1024   # raised scoped limit (OK on v5e/v6e/v7x)


def _round_up(x, m):
    return ((x + m - 1) // m) * m


def _pick_tiles(M, N, d_pad, in_bytes, block_m=None, block_n=None):
    """Choose (tm, tn) under a VMEM budget, biased toward large tm."""
    # tn: lane-aligned; 256 fills the v6e/v7x MXU N dimension (128 is enough on v5e).
    if block_n is not None:
        tn = _round_up(min(block_n, _round_up(N, 128)), 128)
    else:
        tn = 256 if N >= 256 else _round_up(N, 128)

    def fits(tm):
        inputs = 2 * (tm + tn) * d_pad * in_bytes     # double-buffered input tiles
        temps = 4 * tm * tn * 4                       # sim + masked copies + min temps (f32)
        return inputs + temps <= _TILE_VMEM_BUDGET

    if block_m is not None:
        tm = _round_up(min(block_m, _round_up(M, 8)), 8)
    else:
        tm = min(1024, _round_up(M, 8))
        while tm > 8 and not fits(tm):
            tm = _round_up(tm // 2, 8)
        # v7x megacore: keep the "parallel" i axis at >= 2 tiles when M allows,
        # so both TensorCores get work.
        if M >= 64 and _round_up(M, tm) // tm < 2:
            tm = _round_up(pl.cdiv(M, 2), 8)
    return max(tm, 8), max(tn, 128)


def _cosine_hausdorff_kernel(x_ref, yt_ref, *out_and_scratch, directed,
                             has_row_pad, has_col_pad, m_rem, n_rem):
    """Grid = (i row-tiles ["parallel"], j col-tiles ["arbitrary"]).

    x_ref : (tm, d_pad)  pre-normalized set1 tile (mxu_dtype)
    yt_ref: (d_pad, tn)  pre-normalized, pre-transposed set2 tile (mxu_dtype)
    """
    if directed:
        rowmin_ref, rowmin_sc = out_and_scratch
        colmin_ref = None
    else:
        rowmin_ref, colmin_ref, rowmin_sc = out_and_scratch

    i = pl.program_id(0)
    j = pl.program_id(1)
    ni = pl.num_programs(0)
    nj = pl.num_programs(1)
    tm = x_ref.shape[0]
    tn = yt_ref.shape[1]

    # Pairwise cosine-similarity tile on the MXU (operands already normalized).
    sim = jnp.dot(x_ref[...], yt_ref[...], preferred_element_type=jnp.float32)

    # ---- term_1: running row-min kept in VMEM scratch across the j axis. ----
    @pl.when(j == 0)
    def _():
        rowmin_sc[...] = jnp.full(rowmin_sc.shape, _MASK, rowmin_sc.dtype)

    if has_col_pad:
        # Only the last j tile contains padded (zero) columns -> mask there only.
        @pl.when(j < nj - 1)
        def _():
            rowmin_sc[...] = jnp.minimum(
                rowmin_sc[...], jnp.min(sim, axis=1, keepdims=True))

        @pl.when(j == nj - 1)
        def _():
            col_valid = lax.broadcasted_iota(jnp.int32, (1, tn), 1) < n_rem
            rowmin_sc[...] = jnp.minimum(
                rowmin_sc[...],
                jnp.min(jnp.where(col_valid, sim, _MASK), axis=1, keepdims=True))
    else:
        rowmin_sc[...] = jnp.minimum(
            rowmin_sc[...], jnp.min(sim, axis=1, keepdims=True))

    # Single HBM write per i-tile (padded set1 rows yield meaningless values;
    # the wrapper slices [:M] before the mean).
    @pl.when(j == nj - 1)
    def _():
        rowmin_ref[...] = rowmin_sc[...]

    # ---- term_2: per-row-tile partial column minima (skipped if directed). ----
    if not directed:
        if has_row_pad:
            @pl.when(i < ni - 1)
            def _():
                colmin_ref[0] = jnp.min(sim, axis=0, keepdims=True)

            @pl.when(i == ni - 1)
            def _():
                row_valid = lax.broadcasted_iota(jnp.int32, (tm, 1), 0) < m_rem
                colmin_ref[0] = jnp.min(jnp.where(row_valid, sim, _MASK),
                                        axis=0, keepdims=True)
        else:
            colmin_ref[0] = jnp.min(sim, axis=0, keepdims=True)


def cosine_averaged_hausdorff_loss(set1, set2, *, directed=False,
                                   mxu_dtype=jnp.bfloat16,
                                   block_m=None, block_n=None):
    """Averaged Hausdorff distance over cosine similarity (Pallas TPU)."""
    assert set1.ndim == 2, f"got {set1.ndim}"
    assert set2.ndim == 2, f"got {set2.ndim}"
    assert set1.shape[1] == set2.shape[1], (
        "The points in both sets must have the same number of dimensions, "
        f"got {set1.shape[1]} and {set2.shape[1]}."
    )

    M, D = set1.shape
    N, _ = set2.shape
    in_bytes = jnp.dtype(mxu_dtype).itemsize

    # D padded to a lane-aligned multiple of 128 (full-vreg MXU K dimension).
    d_pad = _round_up(D, 128)
    tm, tn = _pick_tiles(M, N, d_pad, in_bytes, block_m=block_m, block_n=block_n)
    m_pad = _round_up(M, tm)
    n_pad = _round_up(N, tn)
    n_mi = m_pad // tm
    n_nj = n_pad // tn

    has_row_pad = m_pad != M
    has_col_pad = n_pad != N
    m_rem = M - (n_mi - 1) * tm      # valid rows in the last i tile (static)
    n_rem = N - (n_nj - 1) * tn      # valid cols in the last j tile (static)

    # Hoisted normalization (O((M+N)*D), once):  v / max(||v||, eps) via
    # rsqrt + eps clamp, zero-pad (numerically inert), cast to MXU dtype,
    # pre-transpose set2 so the kernel feeds the MXU with no in-kernel XLU work.
    x = set1.astype(jnp.float32)
    y = set2.astype(jnp.float32)
    x_inv = jnp.minimum(lax.rsqrt(jnp.sum(x * x, axis=1, keepdims=True)), 1.0 / _EPS)
    y_inv = jnp.minimum(lax.rsqrt(jnp.sum(y * y, axis=1, keepdims=True)), 1.0 / _EPS)
    xp = jnp.pad(x * x_inv, ((0, m_pad - M), (0, d_pad - D))).astype(mxu_dtype)
    ytp = jnp.pad(y * y_inv, ((0, n_pad - N), (0, d_pad - D))).astype(mxu_dtype).T

    kernel = functools.partial(
        _cosine_hausdorff_kernel, directed=directed,
        has_row_pad=has_row_pad, has_col_pad=has_col_pad,
        m_rem=m_rem, n_rem=n_rem)

    out_specs = [pl.BlockSpec((tm, 1), lambda i, j: (i, 0))]
    out_shape = [jax.ShapeDtypeStruct((m_pad, 1), jnp.float32)]
    if not directed:
        out_specs.append(pl.BlockSpec((1, 1, tn), lambda i, j: (i, 0, j)))
        out_shape.append(jax.ShapeDtypeStruct((n_mi, 1, n_pad), jnp.float32))

    cost = pl.CostEstimate(
        flops=int(2 * m_pad * n_pad * d_pad),
        transcendentals=0,
        bytes_accessed=int(m_pad * d_pad * in_bytes
                           + n_mi * n_pad * d_pad * in_bytes
                           + m_pad * 4
                           + (0 if directed else n_mi * n_pad * 4)))

    outs = pl.pallas_call(
        kernel,
        grid=(n_mi, n_nj),
        in_specs=[
            pl.BlockSpec((tm, d_pad), lambda i, j: (i, 0)),
            pl.BlockSpec((d_pad, tn), lambda i, j: (0, j)),
        ],
        out_specs=out_specs,
        out_shape=out_shape,
        scratch_shapes=[pltpu.VMEM((tm, 1), jnp.float32)],
        compiler_params=pltpu.CompilerParams(
            dimension_semantics=("parallel", "arbitrary"),
            vmem_limit_bytes=_VMEM_LIMIT_BYTES),
        cost_estimate=cost,
    )(xp, ytp)

    rowmin = outs[0]
    term_1 = jnp.mean(rowmin[:M, 0])
    if directed:
        return term_1
    colmin = outs[1]
    col_min = jnp.min(colmin[:, 0, :N], axis=0)
    term_2 = jnp.mean(col_min)
    return term_1 + term_2


def _reference(set1, set2, directed=False):
    x = set1.astype(jnp.float32)
    y = set2.astype(jnp.float32)
    xn = x / jnp.maximum(jnp.linalg.norm(x, axis=1, keepdims=True), _EPS)
    yn = y / jnp.maximum(jnp.linalg.norm(y, axis=1, keepdims=True), _EPS)
    sim = xn @ yn.T
    term_1 = jnp.mean(jnp.min(sim, axis=1))
    if directed:
        return term_1
    return term_1 + jnp.mean(jnp.min(sim, axis=0))


if __name__ == "__main__":
    key = jax.random.PRNGKey(0)
    k1, k2, k3, k4 = jax.random.split(key, 4)

    # Small case (single grid point; D and N padded to lane width).
    s1 = jax.random.normal(k1, (16, 32), dtype=jnp.float32)
    s2 = jax.random.normal(k2, (8, 32), dtype=jnp.float32)
    ref = _reference(s1, s2)
    # f32 MXU operands -> tight tolerance.
    loss_f32 = jax.block_until_ready(
        cosine_averaged_hausdorff_loss(s1, s2, mxu_dtype=jnp.float32))
    assert jnp.allclose(loss_f32, ref, atol=1e-5, rtol=1e-5), (loss_f32, ref)
    # bf16 default (fast MXU path) -> looser tolerance is intentional.
    loss_bf16 = jax.block_until_ready(cosine_averaged_hausdorff_loss(s1, s2))
    assert jnp.allclose(loss_bf16, ref, atol=5e-2, rtol=5e-2), (loss_bf16, ref)

    # Multi-tile case: exercises the (M-tile, N-tile) grid, the resident
    # row-min scratch accumulator, boundary-only padding masks and the
    # partial col-min output.
    s1b = jax.random.normal(k3, (300, 48), dtype=jnp.float32)
    s2b = jax.random.normal(k4, (200, 48), dtype=jnp.float32)
    ref_b = _reference(s1b, s2b)
    loss_b = jax.block_until_ready(
        cosine_averaged_hausdorff_loss(s1b, s2b, mxu_dtype=jnp.float32,
                                       block_m=128, block_n=128))
    assert jnp.allclose(loss_b, ref_b, atol=1e-5, rtol=1e-5), (loss_b, ref_b)

    # Default (auto) tiling path, bf16 operands.
    loss_auto = jax.block_until_ready(cosine_averaged_hausdorff_loss(s1b, s2b))
    assert jnp.allclose(loss_auto, ref_b, atol=5e-2, rtol=5e-2), (loss_auto, ref_b)

    # Directed variant (term_1 only; col-min path statically compiled out).
    ref_d = _reference(s1b, s2b, directed=True)
    loss_d = jax.block_until_ready(
        cosine_averaged_hausdorff_loss(s1b, s2b, directed=True,
                                       mxu_dtype=jnp.float32,
                                       block_m=128, block_n=128))
    assert jnp.allclose(loss_d, ref_d, atol=1e-5, rtol=1e-5), (loss_d, ref_d)

    print("KERNEL_OK")
</pallas_src>

<mosaic_0001>
module attributes {stable_mosaic.version = 11 : i64} {
  func.func @_cosine_hausdorff_kernel(%arg0: i32, %arg1: i32, %arg2: memref<16x128xf32, #tpu.memory_space<vmem>>, %arg3: memref<128x128xf32, #tpu.memory_space<vmem>>, %arg4: memref<16x1xf32, #tpu.memory_space<vmem>>, %arg5: memref<1x1x128xf32, #tpu.memory_space<vmem>>, %arg6: memref<16x1xf32, #tpu.memory_space<vmem>>) attributes {dimension_semantics = [#tpu.dimension_semantics<parallel>, #tpu.dimension_semantics<arbitrary>], iteration_bounds = array<i64: 1, 1>, scalar_prefetch = 0 : i64, scratch_operands = 1 : i64, tpu.core_type = #tpu.core_type<tc>, window_params = [{transform_indices = @transform_0, window_bounds = array<i64: 16, 128>}, {transform_indices = @transform_1, window_bounds = array<i64: 128, 128>}, {transform_indices = @transform_2, window_bounds = array<i64: 16, 1>}, {transform_indices = @transform_3, window_bounds = array<i64: 1, 1, 128>}]} {
    %c0 = arith.constant 0 : index
    %c0_0 = arith.constant 0 : index
    %0 = vector.load %arg2[%c0, %c0_0] : memref<16x128xf32, #tpu.memory_space<vmem>>, vector<16x128xf32>
    %c0_1 = arith.constant 0 : index
    %c0_2 = arith.constant 0 : index
    %1 = vector.load %arg3[%c0_1, %c0_2] : memref<128x128xf32, #tpu.memory_space<vmem>>, vector<128x128xf32>
    %cst = arith.constant dense<0.000000e+00> : vector<16x128xf32>
    %2 = tpu.matmul %0, %1, %cst {dimension_numbers = #tpu.dot_dimension_numbers<[1], [0], [0], [1], [0, 0, 1, 1], [], []>} : vector<16x128xf32>, vector<128x128xf32>, vector<16x128xf32> -> vector<16x128xf32>
    %c0_i32 = arith.constant 0 : i32
    %3 = arith.cmpi eq, %arg1, %c0_i32 : i32
    %4 = arith.extui %3 : i1 to i32
    %c0_i32_3 = arith.constant 0 : i32
    %5 = arith.cmpi ne, %4, %c0_i32_3 : i32
    scf.if %5 {
      %cst_14 = arith.constant 2.000000e+00 : f32
      %20 = vector.broadcast %cst_14 : f32 to vector<16x1xf32>
      %c0_15 = arith.constant 0 : index
      %c0_16 = arith.constant 0 : index
      %21 = vector.load %arg6[%c0_15, %c0_16] : memref<16x1xf32, #tpu.memory_space<vmem>>, vector<16x1xf32>
      tpu.vector_store %arg6[%c0_15, %c0_16], %20 {strides = array<i32>} : memref<16x1xf32, #tpu.memory_space<vmem>>, vector<16x1xf32>,
    } else {
    }
    %c0_i32_4 = arith.constant 0 : i32
    %6 = arith.cmpi slt, %arg1, %c0_i32_4 : i32
    %7 = arith.extui %6 : i1 to i32
    %c0_i32_5 = arith.constant 0 : i32
    %8 = arith.cmpi ne, %7, %c0_i32_5 : i32
    scf.if %8 {
      %c0_14 = arith.constant 0 : index
      %c0_15 = arith.constant 0 : index
      %20 = vector.load %arg6[%c0_14, %c0_15] : memref<16x1xf32, #tpu.memory_space<vmem>>, vector<16x1xf32>
      %cst_16 = arith.constant dense<0x7F800000> : vector<16xf32>
      %21 = vector.multi_reduction <minimumf>, %2, %cst_16 [1] : vector<16x128xf32> to vector<16xf32>
      %22 = vector.shape_cast %21 : vector<16xf32> to vector<16x1xf32>
      %23 = arith.minimumf %20, %22 : vector<16x1xf32>
      %c0_17 = arith.constant 0 : index
      %c0_18 = arith.constant 0 : index
      %24 = vector.load %arg6[%c0_17, %c0_18] : memref<16x1xf32, #tpu.memory_space<vmem>>, vector<16x1xf32>
      tpu.vector_store %arg6[%c0_17, %c0_18], %23 {strides = array<i32>} : memref<16x1xf32, #tpu.memory_space<vmem>>, vector<16x1xf32>,
    } else {
    }
    %c0_i32_6 = arith.constant 0 : i32
    %9 = arith.cmpi eq, %arg1, %c0_i32_6 : i32
    %10 = arith.extui %9 : i1 to i32
    %c0_i32_7 = arith.constant 0 : i32
    %11 = arith.cmpi ne, %10, %c0_i32_7 : i32
    scf.if %11 {
      %20 = tpu.iota {dimensions = array<i32: 1>} : vector<1x128xi32>
      %c8_i32 = arith.constant 8 : i32
      %21 = vector.broadcast %c8_i32 : i32 to vector<1x128xi32>
      %22 = arith.cmpi slt, %20, %21 : vector<1x128xi32>
      %c0_14 = arith.constant 0 : index
      %c0_15 = arith.constant 0 : index
      %23 = vector.load %arg6[%c0_14, %c0_15] : memref<16x1xf32, #tpu.memory_space<vmem>>, vector<16x1xf32>
      %cst_16 = arith.constant 2.000000e+00 : f32
      %24 = vector.shape_cast %22 : vector<1x128xi1> to vector<1x128xi1>
      %25 = vector.broadcast %24 : vector<1x128xi1> to vector<16x128xi1>
      %26 = vector.broadcast %cst_16 : f32 to vector<16x128xf32>
      %27 = arith.select %25, %2, %26 : vector<16x128xi1>, vector<16x128xf32>
      %cst_17 = arith.constant dense<0x7F800000> : vector<16xf32>
      %28 = vector.multi_reduction <minimumf>, %27, %cst_17 [1] : vector<16x128xf32> to vector<16xf32>
      %29 = vector.shape_cast %28 : vector<16xf32> to vector<16x1xf32>
      %30 = arith.minimumf %23, %29 : vector<16x1xf32>
      %c0_18 = arith.constant 0 : index
      %c0_19 = arith.constant 0 : index
      %31 = vector.load %arg6[%c0_18, %c0_19] : memref<16x1xf32, #tpu.memory_space<vmem>>, vector<16x1xf32>
      tpu.vector_store %arg6[%c0_18, %c0_19], %30 {strides = array<i32>} : memref<16x1xf32, #tpu.memory_space<vmem>>, vector<16x1xf32>,
    } else {
    }
    %c0_i32_8 = arith.constant 0 : i32
    %12 = arith.cmpi eq, %arg1, %c0_i32_8 : i32
    %13 = arith.extui %12 : i1 to i32
    %c0_i32_9 = arith.constant 0 : i32
    %14 = arith.cmpi ne, %13, %c0_i32_9 : i32
    scf.if %14 {
      %c0_14 = arith.constant 0 : index
      %c0_15 = arith.constant 0 : index
      %20 = vector.load %arg6[%c0_14, %c0_15] : memref<16x1xf32, #tpu.memory_space<vmem>>, vector<16x1xf32>
      %c0_16 = arith.constant 0 : index
      %c0_17 = arith.constant 0 : index
      %21 = vector.load %arg4[%c0_16, %c0_17] : memref<16x1xf32, #tpu.memory_space<vmem>>, vector<16x1xf32>
      tpu.vector_store %arg4[%c0_16, %c0_17], %20 {strides = array<i32>} : memref<16x1xf32, #tpu.memory_space<vmem>>, vector<16x1xf32>,
    } else {
    }
    %cst_10 = arith.constant dense<0x7F800000> : vector<128xf32>
    %15 = vector.multi_reduction <minimumf>, %2, %cst_10 [0] : vector<16x128xf32> to vector<128xf32>
    %16 = vector.shape_cast %15 : vector<128xf32> to vector<1x128xf32>
    %c0_11 = arith.constant 0 : index
    %c0_12 = arith.constant 0 : index
    %c0_13 = arith.constant 0 : index
    %17 = vector.load %arg5[%c0_11, %c0_12, %c0_13] : memref<1x1x128xf32, #tpu.memory_space<vmem>>, vector<1x1x128xf32>
    %18 = vector.shape_cast %17 : vector<1x1x128xf32> to vector<1x128xf32>
    %19 = vector.shape_cast %16 : vector<1x128xf32> to vector<1x1x128xf32>
    tpu.vector_store %arg5[%c0_11, %c0_12, %c0_13], %19 {strides = array<i32>} : memref<1x1x128xf32, #tpu.memory_space<vmem>>, vector<1x1x128xf32>,
    return
  }
  func.func @transform_0(%arg0: i32, %arg1: i32) -> (i32, i32) {
    %c0_i32 = arith.constant 0 : i32
    %c0_i32_0 = arith.constant 0 : i32
    return %arg0, %c0_i32 : i32, i32
  }
  func.func @transform_1(%arg0: i32, %arg1: i32) -> (i32, i32) {
    %c0_i32 = arith.constant 0 : i32
    %c0_i32_0 = arith.constant 0 : i32
    return %c0_i32, %arg1 : i32, i32
  }
  func.func @transform_2(%arg0: i32, %arg1: i32) -> (i32, i32) {
    %c0_i32 = arith.constant 0 : i32
    %c0_i32_0 = arith.constant 0 : i32
    return %arg0, %c0_i32 : i32, i32
  }
  func.func @transform_3(%arg0: i32, %arg1: i32) -> (i32, i32, i32) {
    %c0_i32 = arith.constant 0 : i32
    %c0_i32_0 = arith.constant 0 : i32
    return %arg0, %c0_i32, %arg1 : i32, i32, i32
  }
}

</mosaic_0001>

<bundles_post_ra>
// kernel: tpu_custom_call.1
= control target key start
LH: loop header
LB: loop body
LE: loop exit
PB: predicated region body
PF: predicated region fallthrough
CT: control target
= control target key end

     0   :  { %9 = vsyncpa [#allocation4], 0  ;;  %s382_s0 = inlined_call_operand.hbm [shape: f32[16,128], index: 0, kind: input, shape index: {}]   ;;  %s383_s1 = inlined_call_operand.hbm [shape: f32[128,128], index: 1, kind: input, shape index: {}]   ;;  %s384_s2 = inlined_call_operand.vmem [shape: f32[16,1], index: 2, kind: output, shape index: {0}]   ;;  %s385_s3 = inlined_call_operand.hbm [shape: f32[1,1,128], index: 3, kind: output, shape index: {1}]  }
   0x1   :  { %10 = vsyncpa [#allocation7], 0 }
   0x2   :  { %11 = vsyncpa [#allocation5], 0  ;;  %s335_s12 = smov [#allocation3]  }
   0x3   :  { %s17_s13 = sshll.u32 %s335_s12, 4  ;;  %s18_s13 = int_to_ptr.vmem [resolvable:$true] %s17_s13 }
   0x4   :  { %s277_s14 = scalar_lea.vmem %s18_s13, 256  ;;  %p282_p1 = scmp.lt.s32.totalorder %s18_s13, %s18_s13 }
   0x5   :  { %p278_p0 = scmp.ne.s32.totalorder %s18_s13, %s277_s14  ;;  %p283_p2 = scmp.lt.s32.totalorder %s277_s14, %s277_s14 }
   0x7   :  { %p284_p3 = por %p283_p2, %p282_p1 }
   0x9   :  { %p285_p4 = pnand %p284_p3, %p278_p0 }
   0xb   :  { %288 = shalt.err (!%p285_p4)
}
   0xc   :  { %s336_s15 = smov 128   ;;  %s337_s16 = smov 8  }
   0xd   :  { %23 = dma.hbm_to_vmem [thread:$0]  %s382_s0, 256, %s18_s13, [#allocation4], %s336_s15, %s336_s15, %s337_s16  }
   0xe   :  { %s338_s19 = smov [#allocation6]  }
   0xf   :  { %s29_s20 = sshll.u32 %s338_s19, 4  ;;  %s30_s20 = int_to_ptr.vmem [resolvable:$true] %s29_s20 }
  0x10   :  { %s297_s21 = scalar_lea.vmem %s30_s20, 2048  ;;  %p302_p6 = scmp.lt.s32.totalorder %s30_s20, %s30_s20 }
  0x11   :  { %p298_p5 = scmp.ne.s32.totalorder %s30_s20, %s297_s21  ;;  %p303_p7 = scmp.lt.s32.totalorder %s297_s21, %s297_s21 }
  0x13   :  { %p304_p8 = por %p303_p7, %p302_p6 }
  0x15   :  { %p305_p9 = pnand %p304_p8, %p298_p5 }
  0x17   :  { %308 = shalt.err (!%p305_p9)
}
  0x18   :  { %35 = dma.hbm_to_vmem [thread:$0]  %s383_s1, 2048, %s30_s20, [#allocation7], %s336_s15, %s336_s15, %s337_s16  }
  0x19   :  { %329 = dma.done.wait [#allocation4], 256  }
  0x1a   :  { %330 = vsyncadd [#allocation4], 4294967040 }
  0x1b   :  { %331 = dma.done.wait [#allocation7], 2048  }
  0x1c   :  { %332 = vsyncadd [#allocation7], 4294965248  ;;  %v59_v0 = vld [vmem:[#allocation6 + $0x78] sm:$0xff]  ;;  %v58_v1 = vld [vmem:[#allocation6 + $0x70] sm:$0xff]  ;;  %vm139_vm0 = vcmask 7168   ;;  %v339_v18 = vmov 2.0   ;;  %v160_v19 = vlaneseq }
  0x1d   :  { %228 = vmatprep.subr.mxu0 %v59_v0  ;;  %v57_v2 = vld [vmem:[#allocation6 + $0x68] sm:$0xff]  ;;  %v56_v3 = vld [vmem:[#allocation6 + $0x60] sm:$0xff]  ;;  %v42_v4 = vld [vmem:[#allocation3] sm:$0xff]  ;;  %140 = vst.msk [vmem:[#allocation2] sm:$0xff] %vm139_vm0, %v339_v18  ;;  %s340_s0 = smov [#allocation8]  }
  0x1e   :  { %229 = vmatpush3.msra.mxu0 %v59_v0  ;;  %v55_v5 = vld [vmem:[#allocation6 + $0x58] sm:$0xff]  ;;  %260 = vmatprep.mubr.f32.mxu0 %v42_v4  ;;  %v54_v6 = vld [vmem:[#allocation6 + $0x50] sm:$0xff]  ;;  %v53_v7 = vld [vmem:[#allocation6 + $0x48] sm:$0xff]  ;;  %141 = vst.msk [vmem:[#allocation2 + $0x8] sm:$0xff] %vm139_vm0, %v339_v18  ;;  %v161_v20 = vand.u32 127, %v160_v19  ;;  %s198_s1 = sshll.u32 %s340_s0, 4  ;;  %s199_s1 = int_to_ptr.vmem [resolvable:$true] %s198_s1 }
  0x1f   :  { %230 = vmatprep.subr.mxu0 %v58_v1  ;;  %v52_v8 = vld [vmem:[#allocation6 + $0x40] sm:$0xff]  ;;  %v51_v9 = vld [vmem:[#allocation6 + $0x38] sm:$0xff]  ;;  %v50_v10 = vld [vmem:[#allocation6 + $0x30] sm:$0xff]  ;;  %s309_s24 = scalar_lea.vmem %s199_s1, 16  ;;  %s313_s25 = scalar_lea.vmem %s199_s1, 32 }
  0x20   :  { %231 = vmatpush3.msra.mxu0 %v58_v1  ;;  %v49_v11 = vld [vmem:[#allocation6 + $0x28] sm:$0xff]  ;;  %v48_v12 = vld [vmem:[#allocation6 + $0x20] sm:$0xff]  ;;  %v47_v13 = vld [vmem:[#allocation6 + $0x18] sm:$0xff]  ;;  %vm162_vm1 = vcmp.lt.s32.totalorder %v161_v20, 8  ;;  %p310_p10 = scmp.ne.s32.totalorder %s199_s1, %s309_s24  ;;  %p314_p11 = scmp.lt.s32.totalorder %s199_s1, %s199_s1 }
  0x21   :  { %232 = vmatprep.subr.mxu0 %v57_v2  ;;  %v46_v14 = vld [vmem:[#allocation6 + $0x10] sm:$0xff]  ;;  %v45_v15 = vld [vmem:[#allocation6 + $0x8] sm:$0xff]  ;;  %v44_v16 = vld [vmem:[#allocation6] sm:$0xff]  ;;  %p315_p12 = scmp.lt.s32.totalorder %s313_s25, %s309_s24 }
  0x22   :  { %233 = vmatpush3.msra.mxu0 %v57_v2  ;;  %v43_v17 = vld [vmem:[#allocation3 + $0x8] sm:$0xff] }
  0x23   :  { %234 = vmatprep.subr.mxu0 %v56_v3  ;;  %p316_p13 = por %p315_p12, %p314_p11 }
  0x24   :  { %235 = vmatpush3.msra.mxu0 %v56_v3 }
  0x25   :  { %236 = vmatprep.subr.mxu0 %v55_v5  ;;  %p317_p0 = pnand %p316_p13, %p310_p10 }
  0x26   :  { %237 = vmatpush3.msra.mxu0 %v55_v5 }
  0x27   :  { %238 = vmatprep.subr.mxu0 %v54_v6 }
  0x28   :  { %239 = vmatpush3.msra.mxu0 %v54_v6 }
  0x29   :  { %240 = vmatprep.subr.mxu0 %v53_v7 }
  0x2a   :  { %241 = vmatpush3.msra.mxu0 %v53_v7 }
  0x2b   :  { %242 = vmatprep.subr.mxu0 %v52_v8 }
  0x2c   :  { %243 = vmatpush3.msra.mxu0 %v52_v8 }
  0x2d   :  { %244 = vmatprep.subr.mxu0 %v51_v9 }
  0x2e   :  { %245 = vmatpush3.msra.mxu0 %v51_v9 }
  0x2f   :  { %246 = vmatprep.subr.mxu0 %v50_v10 }
  0x30   :  { %247 = vmatpush3.msra.mxu0 %v50_v10 }
  0x31   :  { %248 = vmatprep.subr.mxu0 %v49_v11 }
  0x32   :  { %249 = vmatpush3.msra.mxu0 %v49_v11 }
  0x33   :  { %250 = vmatprep.subr.mxu0 %v48_v12 }
  0x34   :  { %251 = vmatpush3.msra.mxu0 %v48_v12 }
  0x35   :  { %252 = vmatprep.subr.mxu0 %v47_v13 }
  0x36   :  { %253 = vmatpush3.msra.mxu0 %v47_v13 }
  0x37   :  { %254 = vmatprep.subr.mxu0 %v46_v14 }
  0x38   :  { %255 = vmatpush3.msra.mxu0 %v46_v14 }
  0x39   :  { %256 = vmatprep.subr.mxu0 %v45_v15 }
  0x3a   :  { %257 = vmatpush3.msra.mxu0 %v45_v15 }
  0x3b   :  { %258 = vmatprep.subr.mxu0 %v44_v16 }
  0x3c   :  { %259 = vmatpush3.msra.mxu0 %v44_v16 }
  0x3d   :  { %261 = vmatmul.mubr.f32.vlgmr.msra.gmra.mxu0 %v43_v17 }
  0xfd   :  { %v262_v21 = vpop.f32.mrf.mxu0 }
  0xfe   :  { %v168_v27 = vsel %vm162_vm1, %v262_v21, 2.0 }
  0xff   :  { %v126_v22 = vpop.f32.mrf.mxu0 }
 0x100   :  { %v182_v23 = vmin.f32 %v126_v22, %v262_v21  ;;  %v167_v24 = vsel %vm162_vm1, %v126_v22, 2.0 }
 0x101   :  { %169 = vmin.xlane.f32.xlu0 %v167_v24 }
 0x102   :  { %v183_v25 = vrot.slane %v182_v23, 4 }
 0x104   :  { %v184_v26 = vmin.f32 %v182_v23, %v183_v25 }
 0x105   :  { %171 = vmin.xlane.f32.xlu0 %v168_v27 }
 0x106   :  { %v185_v28 = vrot.slane %v184_v26, 2 }
 0x108   :  { %v186_v29 = vmin.f32 %v184_v26, %v185_v28 }
 0x10a   :  { %v187_v30 = vrot.slane %v186_v29, 1 }
 0x10c   :  { %v188_v31 = vmin.f32 %v186_v29, %v187_v30 }
 0x10e   :  { %189 = vst [vmem:[#allocation8] sm:$0x1] %v188_v31 }
 0x10f   :  { %320 = shalt.err (!%p317_p0)
}
 0x110   :  { %201 = dma.vmem_to_hbm [thread:$0]  %s199_s1, 16, %s385_s3, [#allocation5]   ;;  %v163_v32 = vld [vmem:[#allocation2] sm:$0xff]  ;;  %v164_v35 = vld [vmem:[#allocation2 + $0x8] sm:$0xff] }
 0x18a   :  { %v170_v33 = vpop.xlane.xlu0 %169 }
 0x18b   :  { %v173_v34 = vmin.f32 %v163_v32, %v170_v33 }
 0x18d   :  { %176 = vst.msk [vmem:[#allocation2] sm:$0xff] %vm139_vm0, %v173_v34 }
 0x18e   :  { %v172_v36 = vpop.xlane.xlu0 %171 }
 0x18f   :  { %v174_v37 = vmin.f32 %v164_v35, %v172_v36 }
 0x191   :  { %177 = vst.msk [vmem:[#allocation2 + $0x8] sm:$0xff] %vm139_vm0, %v174_v37 }
 0x194   :  { %v178_v38 = vld [vmem:[#allocation2] sm:$0xff] }
 0x195   :  { %180 = vst.msk [vmem:[%s384_s2] sm:$0xff] %vm139_vm0, %v178_v38 }
 0x198   :  { %v179_v39 = vld [vmem:[#allocation2 + $0x8] sm:$0xff] }
 0x199   :  { %181 = vst.msk [vmem:[%s384_s2 + $0x8] sm:$0xff] %vm139_vm0, %v179_v39 }
 0x19a   :  { %333 = dma.done.wait [#allocation5], 16  }
 0x19b   :  { %334 = vsyncadd [#allocation5], 4294967280 }
 0x19c   :  { %207 = vsyncpa [#allocation4], 1 }
 0x19d   :  { %208 = vsyncpa [#allocation7], 1 }
 0x19e   :  { %209 = vsyncpa [#allocation5], 1 }

</bundles_post_ra>
